<compile_context>
chip_gen: v7x
topology: tpu7x:2x2x1
jax: 0.10.0
libtpu: 0.0.40
codegen_flags: <defaults>
</compile_context>

<pallas_src>
import jax
import jax.numpy as jnp
from jax.experimental import pallas as pl
from jax.experimental.pallas import tpu as pltpu

_LANE = 128
_SUBLANE = 8


def _round_up(x, m):
    return ((x + m - 1) // m) * m


def _make_regress_kernel(n_nodes, in_dim, feat_lane_off, param_offsets, agg_in_bf16):
    mxu_dtype = jnp.bfloat16 if agg_in_bf16 else jnp.float32

    def kernel(data_ref, par_ref, out_ref):
        def param(name):
            r0, rows, cols = param_offsets[name]          # static slice -> no runtime cost
            return par_ref[r0:r0 + rows, 0:cols]

        adj = data_ref[0:n_nodes, 0:n_nodes]              # (N, N), A[i, j] = 1 iff edge j -> i
        x = data_ref[0:n_nodes, feat_lane_off:feat_lane_off + in_dim]   # (N, in_dim)

        # DGL GraphConv norm='both': Â = D_in^{-1/2} A D_out^{-1/2}, degrees clamped >= 1.
        deg_dst = jnp.sum(adj, axis=1, keepdims=True)     # (N, 1) in-degrees  (dst)
        deg_src = jnp.sum(adj, axis=0, keepdims=True)     # (1, N) out-degrees (src)
        norm_dst = jax.lax.rsqrt(jnp.maximum(deg_dst, 1.0))
        norm_src = jax.lax.rsqrt(jnp.maximum(deg_src, 1.0))

        # Fold the src norm into the adjacency columns once (single NxN mul);
        # the dst norm is a cheap (N,1) row-scale after aggregation.
        a_src = (adj * norm_src).astype(mxu_dtype)

        def aggregate(h):
            return norm_dst * jnp.dot(a_src, h.astype(mxu_dtype),
                                      preferred_element_type=jnp.float32)

        # conv1: aggregate at F = in_dim (cheaper when in_dim < hidden), then project.
        h = aggregate(x)
        h = jnp.dot(h.astype(mxu_dtype), param("w1").astype(mxu_dtype),
                    preferred_element_type=jnp.float32) + param("b1")
        h = jnp.maximum(h, 0.0)

        # conv2.
        h = aggregate(h)
        h = jnp.dot(h.astype(mxu_dtype), param("w2").astype(mxu_dtype),
                    preferred_element_type=jnp.float32) + param("b2")
        h = jnp.maximum(h, 0.0)

        # AvgPooling over the (single) graph's nodes -> (1, hidden).
        hg = jnp.sum(h, axis=0, keepdims=True) * (1.0 / n_nodes)

        # MLPReadout(hidden, 1, L=3): M=1 chain kept in f32 (negligible work).
        y = jnp.maximum(jnp.dot(hg, param("f0w"), preferred_element_type=jnp.float32)
                        + param("f0b"), 0.0)
        y = jnp.maximum(jnp.dot(y, param("f1w"), preferred_element_type=jnp.float32)
                        + param("f1b"), 0.0)
        y = jnp.maximum(jnp.dot(y, param("f2w"), preferred_element_type=jnp.float32)
                        + param("f2b"), 0.0)
        y = jnp.dot(y, param("f3w"), preferred_element_type=jnp.float32) + param("f3b")

        out_ref[...] = y.astype(out_ref.dtype)

    return kernel


_PARAM_ORDER = ("w1", "b1", "w2", "b2",
                "f0w", "f0b", "f1w", "f1b", "f2w", "f2b", "f3w", "f3b")


def _pack_params(params):
    """Concatenate all weights/biases into one lane-padded f32 slab (single DMA)."""
    lane_w = max(_round_up(params[name].shape[1], _LANE) for name in _PARAM_ORDER)
    offsets = {}
    blocks = []
    row = 0
    for name in _PARAM_ORDER:
        arr = params[name].astype(jnp.float32)
        r, c = arr.shape
        r_pad = _round_up(r, _SUBLANE)
        blocks.append(jnp.pad(arr, ((0, r_pad - r), (0, lane_w - c))))
        offsets[name] = (row, r, c)
        row += r_pad
    return jnp.concatenate(blocks, axis=0), offsets


def _pack_graph(adj, feat):
    """Pack adjacency + node features into one tile-aligned f32 slab (single DMA)."""
    n = adj.shape[0]
    in_dim = feat.shape[1]
    rows = _round_up(n, _SUBLANE)
    adj_lanes = _round_up(n, _LANE)
    feat_lanes = _round_up(in_dim, _LANE)
    data = jnp.zeros((rows, adj_lanes + feat_lanes), jnp.float32)
    data = data.at[:n, :n].set(adj.astype(jnp.float32))
    data = data.at[:n, adj_lanes:adj_lanes + in_dim].set(feat.astype(jnp.float32))
    return data, adj_lanes


def regress_forward(adj, feat, params, *, agg_in_bf16=None):
    n = adj.shape[0]
    in_dim = feat.shape[1]
    if agg_in_bf16 is None:
        # bf16 MXU inputs (f32 accumulation) only pay off once the N^2-scaling
        # aggregation matmuls are non-trivial; stay exact f32 at tiny sizes.
        agg_in_bf16 = n >= 128

    data, feat_lane_off = _pack_graph(adj, feat)
    par, offsets = _pack_params(params)

    kernel = _make_regress_kernel(n, in_dim, feat_lane_off, offsets, agg_in_bf16)
    vmem = pl.BlockSpec(memory_space=pltpu.MemorySpace.VMEM)
    return pl.pallas_call(
        kernel,
        out_shape=jax.ShapeDtypeStruct((1, 1), jnp.float32),
        in_specs=[vmem, vmem],
        out_specs=vmem,
        compiler_params=pltpu.CompilerParams(vmem_limit_bytes=32 * 1024 * 1024),
    )(data, par)


def _linear_init(key, fan_in, fan_out):
    # Deterministic PyTorch-style uniform init: U(-1/sqrt(fan_in), 1/sqrt(fan_in)).
    kw, kb = jax.random.split(key)
    bound = 1.0 / jnp.sqrt(jnp.float32(fan_in))
    w = jax.random.uniform(kw, (fan_in, fan_out), jnp.float32, -bound, bound)
    b = jax.random.uniform(kb, (1, fan_out), jnp.float32, -bound, bound)
    return w, b


def init_params(key, in_dim, hidden_dim):
    keys = jax.random.split(key, 6)
    params = {}
    # GraphConv weights (DGL GraphConv also uses a (in, out) weight + bias).
    params["w1"], params["b1"] = _linear_init(keys[0], in_dim, hidden_dim)
    params["w2"], params["b2"] = _linear_init(keys[1], hidden_dim, hidden_dim)
    # MLPReadout(hidden_dim, 1, L=3): hidden -> hidden/2 -> hidden/4 -> hidden/8 -> 1.
    d = hidden_dim
    params["f0w"], params["f0b"] = _linear_init(keys[2], d, d // 2)
    params["f1w"], params["f1b"] = _linear_init(keys[3], d // 2, d // 4)
    params["f2w"], params["f2b"] = _linear_init(keys[4], d // 4, d // 8)
    params["f3w"], params["f3b"] = _linear_init(keys[5], d // 8, 1)
    return params


if __name__ == "__main__":
    N = 8          # nodes in the graph
    IN_DIM = 16    # input node-feature dim
    HIDDEN = 32    # hidden dim (must be divisible by 2**3 for MLPReadout L=3)

    key = jax.random.PRNGKey(0)
    k_feat, k_param = jax.random.split(key)

    # Small deterministic graph: directed ring + self-loops (dense adjacency, A[i, j]: edge j -> i).
    idx = jnp.arange(N)
    adj = jnp.zeros((N, N), jnp.float32)
    adj = adj.at[idx, idx].set(1.0)                     # self-loops
    adj = adj.at[idx, (idx + 1) % N].set(1.0)           # ring edges (i+1) -> i

    feat = jax.random.normal(k_feat, (N, IN_DIM), jnp.float32)
    params = init_params(k_param, IN_DIM, HIDDEN)

    out = regress_forward(adj, feat, params)
    jax.block_until_ready(out)
    assert out.shape == (1, 1)
    print("KERNEL_OK")
</pallas_src>

<mosaic_0001>
module attributes {stable_mosaic.version = 11 : i64} {
  func.func @kernel(%arg0: memref<8x256xf32, #tpu.memory_space<vmem>>, %arg1: memref<160x128xf32, #tpu.memory_space<vmem>>, %arg2: memref<1x1xf32, #tpu.memory_space<vmem>>) attributes {dimension_semantics = [], scalar_prefetch = 0 : i64, scratch_operands = 0 : i64, tpu.core_type = #tpu.core_type<tc>} {
    %c0 = arith.constant 0 : index
    %c0_0 = arith.constant 0 : index
    %0 = vector.load %arg0[%c0, %c0_0] : memref<8x256xf32, #tpu.memory_space<vmem>>, vector<8x8xf32>
    %c0_1 = arith.constant 0 : index
    %c128 = arith.constant 128 : index
    %1 = vector.load %arg0[%c0_1, %c128] : memref<8x256xf32, #tpu.memory_space<vmem>>, vector<8x16xf32>
    %cst = arith.constant dense<0.000000e+00> : vector<8xf32>
    %2 = vector.multi_reduction <add>, %0, %cst [1] : vector<8x8xf32> to vector<8xf32>
    %3 = vector.shape_cast %2 : vector<8xf32> to vector<8x1xf32>
    %cst_2 = arith.constant dense<0.000000e+00> : vector<8xf32>
    %4 = vector.multi_reduction <add>, %0, %cst_2 [0] : vector<8x8xf32> to vector<8xf32>
    %5 = vector.shape_cast %4 : vector<8xf32> to vector<1x8xf32>
    %cst_3 = arith.constant 1.000000e+00 : f32
    %6 = vector.broadcast %cst_3 : f32 to vector<8x1xf32>
    %7 = arith.maximumf %3, %6 : vector<8x1xf32>
    %8 = math.rsqrt %7 : vector<8x1xf32>
    %cst_4 = arith.constant 1.000000e+00 : f32
    %9 = vector.broadcast %cst_4 : f32 to vector<1x8xf32>
    %10 = arith.maximumf %5, %9 : vector<1x8xf32>
    %11 = math.rsqrt %10 : vector<1x8xf32>
    %12 = vector.broadcast %11 : vector<1x8xf32> to vector<8x8xf32>
    %13 = arith.mulf %0, %12 : vector<8x8xf32>
    %cst_5 = arith.constant dense<0.000000e+00> : vector<8x16xf32>
    %14 = tpu.matmul %13, %1, %cst_5 {dimension_numbers = #tpu.dot_dimension_numbers<[1], [0], [0], [1], [0, 0, 1, 1], [], []>} : vector<8x8xf32>, vector<8x16xf32>, vector<8x16xf32> -> vector<8x16xf32>
    %15 = vector.broadcast %8 : vector<8x1xf32> to vector<8x16xf32>
    %16 = arith.mulf %15, %14 : vector<8x16xf32>
    %c0_6 = arith.constant 0 : index
    %c0_7 = arith.constant 0 : index
    %17 = vector.load %arg1[%c0_6, %c0_7] : memref<160x128xf32, #tpu.memory_space<vmem>>, vector<16x32xf32>
    %cst_8 = arith.constant dense<0.000000e+00> : vector<8x32xf32>
    %18 = tpu.matmul %16, %17, %cst_8 {dimension_numbers = #tpu.dot_dimension_numbers<[1], [0], [0], [1], [0, 0, 1, 1], [], []>} : vector<8x16xf32>, vector<16x32xf32>, vector<8x32xf32> -> vector<8x32xf32>
    %c16 = arith.constant 16 : index
    %c0_9 = arith.constant 0 : index
    %19 = vector.load %arg1[%c16, %c0_9] : memref<160x128xf32, #tpu.memory_space<vmem>>, vector<1x32xf32>
    %20 = vector.broadcast %19 : vector<1x32xf32> to vector<8x32xf32>
    %21 = arith.addf %18, %20 : vector<8x32xf32>
    %cst_10 = arith.constant 0.000000e+00 : f32
    %22 = vector.broadcast %cst_10 : f32 to vector<8x32xf32>
    %23 = arith.maximumf %21, %22 : vector<8x32xf32>
    %cst_11 = arith.constant dense<0.000000e+00> : vector<8x32xf32>
    %24 = tpu.matmul %13, %23, %cst_11 {dimension_numbers = #tpu.dot_dimension_numbers<[1], [0], [0], [1], [0, 0, 1, 1], [], []>} : vector<8x8xf32>, vector<8x32xf32>, vector<8x32xf32> -> vector<8x32xf32>
    %25 = vector.broadcast %8 : vector<8x1xf32> to vector<8x32xf32>
    %26 = arith.mulf %25, %24 : vector<8x32xf32>
    %c24 = arith.constant 24 : index
    %c0_12 = arith.constant 0 : index
    %27 = vector.load %arg1[%c24, %c0_12] : memref<160x128xf32, #tpu.memory_space<vmem>>, vector<32x32xf32>
    %cst_13 = arith.constant dense<0.000000e+00> : vector<8x32xf32>
    %28 = tpu.matmul %26, %27, %cst_13 {dimension_numbers = #tpu.dot_dimension_numbers<[1], [0], [0], [1], [0, 0, 1, 1], [], []>} : vector<8x32xf32>, vector<32x32xf32>, vector<8x32xf32> -> vector<8x32xf32>
    %c56 = arith.constant 56 : index
    %c0_14 = arith.constant 0 : index
    %29 = vector.load %arg1[%c56, %c0_14] : memref<160x128xf32, #tpu.memory_space<vmem>>, vector<1x32xf32>
    %30 = vector.broadcast %29 : vector<1x32xf32> to vector<8x32xf32>
    %31 = arith.addf %28, %30 : vector<8x32xf32>
    %cst_15 = arith.constant 0.000000e+00 : f32
    %32 = vector.broadcast %cst_15 : f32 to vector<8x32xf32>
    %33 = arith.maximumf %31, %32 : vector<8x32xf32>
    %cst_16 = arith.constant dense<0.000000e+00> : vector<32xf32>
    %34 = vector.multi_reduction <add>, %33, %cst_16 [0] : vector<8x32xf32> to vector<32xf32>
    %35 = vector.shape_cast %34 : vector<32xf32> to vector<1x32xf32>
    %cst_17 = arith.constant 1.250000e-01 : f32
    %36 = vector.broadcast %cst_17 : f32 to vector<1x32xf32>
    %37 = arith.mulf %35, %36 : vector<1x32xf32>
    %c64 = arith.constant 64 : index
    %c0_18 = arith.constant 0 : index
    %38 = vector.load %arg1[%c64, %c0_18] : memref<160x128xf32, #tpu.memory_space<vmem>>, vector<32x16xf32>
    %cst_19 = arith.constant dense<0.000000e+00> : vector<1x16xf32>
    %39 = tpu.matmul %37, %38, %cst_19 {dimension_numbers = #tpu.dot_dimension_numbers<[1], [0], [0], [1], [0, 0, 1, 1], [], []>} : vector<1x32xf32>, vector<32x16xf32>, vector<1x16xf32> -> vector<1x16xf32>
    %c96 = arith.constant 96 : index
    %c0_20 = arith.constant 0 : index
    %40 = vector.load %arg1[%c96, %c0_20] : memref<160x128xf32, #tpu.memory_space<vmem>>, vector<1x16xf32>
    %41 = arith.addf %39, %40 : vector<1x16xf32>
    %cst_21 = arith.constant 0.000000e+00 : f32
    %42 = vector.broadcast %cst_21 : f32 to vector<1x16xf32>
    %43 = arith.maximumf %41, %42 : vector<1x16xf32>
    %c104 = arith.constant 104 : index
    %c0_22 = arith.constant 0 : index
    %44 = vector.load %arg1[%c104, %c0_22] : memref<160x128xf32, #tpu.memory_space<vmem>>, vector<16x8xf32>
    %cst_23 = arith.constant dense<0.000000e+00> : vector<1x8xf32>
    %45 = tpu.matmul %43, %44, %cst_23 {dimension_numbers = #tpu.dot_dimension_numbers<[1], [0], [0], [1], [0, 0, 1, 1], [], []>} : vector<1x16xf32>, vector<16x8xf32>, vector<1x8xf32> -> vector<1x8xf32>
    %c120 = arith.constant 120 : index
    %c0_24 = arith.constant 0 : index
    %46 = vector.load %arg1[%c120, %c0_24] : memref<160x128xf32, #tpu.memory_space<vmem>>, vector<1x8xf32>
    %47 = arith.addf %45, %46 : vector<1x8xf32>
    %cst_25 = arith.constant 0.000000e+00 : f32
    %48 = vector.broadcast %cst_25 : f32 to vector<1x8xf32>
    %49 = arith.maximumf %47, %48 : vector<1x8xf32>
    %c128_26 = arith.constant 128 : index
    %c0_27 = arith.constant 0 : index
    %50 = vector.load %arg1[%c128_26, %c0_27] : memref<160x128xf32, #tpu.memory_space<vmem>>, vector<8x4xf32>
    %cst_28 = arith.constant dense<0.000000e+00> : vector<1x4xf32>
    %51 = tpu.matmul %49, %50, %cst_28 {dimension_numbers = #tpu.dot_dimension_numbers<[1], [0], [0], [1], [0, 0, 1, 1], [], []>} : vector<1x8xf32>, vector<8x4xf32>, vector<1x4xf32> -> vector<1x4xf32>
    %c136 = arith.constant 136 : index
    %c0_29 = arith.constant 0 : index
    %52 = vector.load %arg1[%c136, %c0_29] : memref<160x128xf32, #tpu.memory_space<vmem>>, vector<1x4xf32>
    %53 = arith.addf %51, %52 : vector<1x4xf32>
    %cst_30 = arith.constant 0.000000e+00 : f32
    %54 = vector.broadcast %cst_30 : f32 to vector<1x4xf32>
    %55 = arith.maximumf %53, %54 : vector<1x4xf32>
    %c144 = arith.constant 144 : index
    %c0_31 = arith.constant 0 : index
    %56 = vector.load %arg1[%c144, %c0_31] : memref<160x128xf32, #tpu.memory_space<vmem>>, vector<4x1xf32>
    %cst_32 = arith.constant dense<0.000000e+00> : vector<1x1xf32>
    %57 = tpu.matmul %55, %56, %cst_32 {dimension_numbers = #tpu.dot_dimension_numbers<[1], [0], [0], [1], [0, 0, 1, 1], [], []>} : vector<1x4xf32>, vector<4x1xf32>, vector<1x1xf32> -> vector<1x1xf32>
    %c152 = arith.constant 152 : index
    %c0_33 = arith.constant 0 : index
    %58 = vector.load %arg1[%c152, %c0_33] : memref<160x128xf32, #tpu.memory_space<vmem>>, vector<1x1xf32>
    %59 = arith.addf %57, %58 : vector<1x1xf32>
    %c0_34 = arith.constant 0 : index
    %c0_35 = arith.constant 0 : index
    %60 = vector.load %arg2[%c0_34, %c0_35] : memref<1x1xf32, #tpu.memory_space<vmem>>, vector<1x1xf32>
    tpu.vector_store %arg2[%c0_34, %c0_35], %59 {strides = array<i32>} : memref<1x1xf32, #tpu.memory_space<vmem>>, vector<1x1xf32>,
    return
  }
}

</mosaic_0001>

<bundles_post_ra>
// kernel: tpu_custom_call.1
= control target key start
LH: loop header
LB: loop body
LE: loop exit
PB: predicated region body
PF: predicated region fallthrough
CT: control target
= control target key end

     0   :  { %7 = vsyncpa [#allocation3], 0  ;;  %s992_s0 = inlined_call_operand.hbm [shape: f32[8,256], index: 0, kind: input, shape index: {}]   ;;  %s993_s1 = inlined_call_operand.hbm [shape: f32[160,128], index: 1, kind: input, shape index: {}]   ;;  %s994_s2 = inlined_call_operand.hbm [shape: f32[1,1], index: 2, kind: output, shape index: {}]  }
   0x1   :  { %8 = vsyncpa [#allocation6], 0 }
   0x2   :  { %9 = vsyncpa [#allocation4], 0  ;;  %s897_s9 = smov [#allocation2]   ;;  %s898_s11 = smov [#allocation5]  }
   0x3   :  { %s16_s10 = sshll.u32 %s897_s9, 4  ;;  %s25_s12 = sshll.u32 %s898_s11, 4  ;;  %s17_s10 = int_to_ptr.vmem [resolvable:$true] %s16_s10  ;;  %s920_s12 = int_to_ptr.vmem [resolvable:$true] %s25_s12 }
   0x4   :  { %s825_s15 = scalar_lea.hbm %s992_s0, 256 }
   0x5   :  { %p826_p0 = scmp.ne.s32.totalorder %s992_s0, %s825_s15  ;;  %p829_p1 = scmp.lt.u32.totalorder %s825_s15, %s992_s0 }
   0x7   :  { %p831_p2 = pnand %p829_p1, %p826_p0 }
   0x9   :  { %834 = shalt.err (!%p831_p2)
}
   0xa   :  { %s835_s20 = scalar_lea.vmem %s17_s10, 256  ;;  %p840_p4 = scmp.lt.s32.totalorder %s17_s10, %s17_s10 }
   0xb   :  { %p836_p3 = scmp.ne.s32.totalorder %s17_s10, %s835_s20  ;;  %p841_p5 = scmp.lt.s32.totalorder %s835_s20, %s835_s20 }
   0xd   :  { %p842_p6 = por %p841_p5, %p840_p4 }
   0xf   :  { %p843_p7 = pnand %p842_p6, %p836_p3 }
  0x11   :  { %846 = shalt.err (!%p843_p7)
}
  0x12   :  { %19 = dma.hbm_to_vmem [thread:$0]  %s992_s0, 256, %s17_s10, [#allocation3]  }
  0x13   :  { %s847_s25 = scalar_lea.hbm %s993_s1, 2560 }
  0x14   :  { %p848_p8 = scmp.ne.s32.totalorder %s993_s1, %s847_s25  ;;  %p851_p9 = scmp.lt.u32.totalorder %s847_s25, %s993_s1 }
  0x16   :  { %p853_p10 = pnand %p851_p9, %p848_p8 }
  0x18   :  { %856 = shalt.err (!%p853_p10)
}
  0x19   :  { %s857_s30 = scalar_lea.vmem %s920_s12, 2560  ;;  %p862_p12 = scmp.lt.s32.totalorder %s920_s12, %s920_s12 }
  0x1a   :  { %p858_p11 = scmp.ne.s32.totalorder %s920_s12, %s857_s30  ;;  %p863_p13 = scmp.lt.s32.totalorder %s857_s30, %s857_s30 }
  0x1c   :  { %p864_p0 = por %p863_p13, %p862_p12 }
  0x1e   :  { %p865_p1 = pnand %p864_p0, %p858_p11 }
  0x20   :  { %868 = shalt.err (!%p865_p1)
}
  0x21   :  { %s899_s0 = smov 128   ;;  %s900_s3 = smov 8  }
  0x22   :  { %31 = dma.hbm_to_vmem [thread:$0]  %s993_s1, 2560, %s920_s12, [#allocation6], %s899_s0, %s899_s0, %s900_s3  }
  0x23   :  { %891 = dma.done.wait [#allocation3], 256  }
  0x24   :  { %892 = vsyncadd [#allocation3], 4294967040 }
  0x25   :  { %893 = dma.done.wait [#allocation6], 2560  }
  0x26   :  { %894 = vsyncadd [#allocation6], 4294964736  ;;  %v901_v0 = vmov 0.0   ;;  %vm902_vm0 = vmmov 0   ;;  %vm40_vm1 = vcmask 64512   ;;  %v39_v1 = vld [vmem:[#allocation2 + $0x8] sm:$0xff] }
  0x27   :  { %739 = vmatprep.subr.mxu0 %v901_v0  ;;  %741 = vmatprep.mubr.msk.f32.mxu0 %vm902_vm0, %v901_v0  ;;  %v38_v2 = vld [vmem:[#allocation2] sm:$0xff]  ;;  %v903_v11 = vmov 0.0|0.0   ;;  %v129_v14 = vld [vmem:[#allocation5] sm:$0xff]  ;;  %v130_v15 = vld [vmem:[#allocation5 + $0x8] sm:$0xff]  ;;  %vm136_vm2 = vcmask 130048   ;;  %vm291_vm3 = vcmask 261120  }
  0x28   :  { %748 = vmatprep.mubr.msk.f32.mxu1 %vm902_vm0, %v901_v0  ;;  %740 = vmatpush3.msra.mxu0 %v39_v1  ;;  %v41_v3 = vsel %vm40_vm1, %v38_v2, 0.0  ;;  %v796_v16 = vpack.c.bf16 %v130_v15, %v129_v14  ;;  %v282_v23 = vld [vmem:[#allocation5 + $0x18] sm:$0xff]  ;;  %v283_v24 = vld [vmem:[#allocation5 + $0x20] sm:$0xff]  ;;  %v705_v26 = vld [vmem:[#allocation5 + $0x10] ss:$0 sm:$0xff]  ;;  %vm612_vm4 = vcmask 1043456  }
  0x29   :  { %v44_v4 = vrot.slane %v41_v3, 4  ;;  %42 = vadd.xlane.f32.xlu0 %v41_v3  ;;  %751 = vmatprep.subr.mxu0 %v901_v0  ;;  %v799_v25 = vpack.c.bf16 %v283_v24, %v282_v23  ;;  %v284_v31 = vld [vmem:[#allocation5 + $0x28] sm:$0xff]  ;;  %v285_v32 = vld [vmem:[#allocation5 + $0x30] sm:$0xff]  ;;  %v374_v37 = vld [vmem:[#allocation5 + $0x40] sm:$0xff]  ;;  %vm608_vm5 = vcmask 31744   ;;  %s904_s1 = smov [#allocation7]  }
  0x2a   :  { %795 = vmatprep.subr.bf16.mxu1 %v903_v11  ;;  %v802_v33 = vpack.c.bf16 %v285_v32, %v284_v31  ;;  %v375_v38 = vld [vmem:[#allocation5 + $0x48] sm:$0xff]  ;;  %v376_v40 = vld [vmem:[#allocation5 + $0x50] sm:$0xff]  ;;  %v377_v41 = vld [vmem:[#allocation5 + $0x58] sm:$0xff]  ;;  %s694_s6 = sshll.u32 %s904_s1, 4  ;;  %vm686_vm6 = vcmask 0   ;;  %s695_s6 = int_to_ptr.vmem [resolvable:$true] %s694_s6 }
  0x2b   :  { %v45_v5 = vadd.f32 %v44_v4, %v41_v3  ;;  %797 = vmatpush3.bf16.msra.mxu1 %v796_v16  ;;  %v805_v39 = vpack.c.bf16 %v375_v38, %v374_v37  ;;  %v808_v42 = vpack.c.bf16 %v377_v41, %v376_v40  ;;  %v708_v43 = vld [vmem:[#allocation5 + $0x38] ss:$0 sm:$0xff]  ;;  %v453_v56 = vld [vmem:[#allocation5 + $0x68] sm:$0xff]  ;;  %v454_v57 = vld [vmem:[#allocation5 + $0x70] sm:$0xff]  ;;  %s869_s7 = scalar_lea.vmem %s695_s6, 16  ;;  %s873_s8 = scalar_lea.vmem %s695_s6, 32 }
  0x2c   :  { %798 = vmatprep.subr.bf16.mxu1 %v903_v11  ;;  %v811_v58 = vpack.c.bf16 %v454_v57, %v453_v56  ;;  %v378_v59 = vld [vmem:[#allocation5 + $0x60] sm:$0x1]  ;;  %p870_p2 = scmp.ne.s32.totalorder %s695_s6, %s869_s7  ;;  %p874_p3 = scmp.lt.s32.totalorder %s695_s6, %s695_s6 }
  0x2d   :  { %v46_v6 = vrot.slane %v45_v5, 2  ;;  %v530_v1 = vld [vmem:[#allocation5 + $0x80] sm:$0xff]  ;;  %p875_p4 = scmp.lt.s32.totalorder %s873_s8, %s869_s7 }
  0x2f   :  { %v47_v7 = vadd.f32 %v46_v6, %v45_v5  ;;  %p876_p5 = por %p875_p4, %p874_p3 }
  0x31   :  { %v48_v8 = vrot.slane %v47_v7, 1  ;;  %p877_p6 = pnand %p876_p5, %p870_p2 }
  0x33   :  { %v49_v9 = vadd.f32 %v48_v8, %v47_v7  ;;  %v606_v7 = vld [vmem:[#allocation5 + $0x90] sm:$0xf]  ;;  %v531_v8 = vld [vmem:[#allocation5 + $0x88] sm:$0x1] }
  0x35   :  { %v52_v10 = vmax.f32 %v49_v9, 1.0 }
  0x37   :  { %821 = vrsqrt.f32 %v52_v10 }
  0x41   :  { %v822_v12 = vpop.eup %821 }
  0x42   :  { %v54_v13 = vmul.f32 %v822_v12, %v38_v2  ;;  %v455_v2 = vld [vmem:[#allocation5 + $0x78] sm:$0x1] }
  0x44   :  { %742 = vmatmul.mubr.msk.f32.vlgmr.msra.gmra.mrb[0].mxu0 %vm40_vm1, %v54_v13 }
  0x45   :  { %753 = vmatprep.mubr.msk.f32.mxu0 %vm902_vm0, %v901_v0 }
  0xb6   :  { %v43_v17 = vpop.xlane.xlu0 %42 }
  0xb7   :  { %v50_v18 = vmax.f32 %v43_v17, 1.0 }
  0xb9   :  { %823 = vrsqrt.f32 %v50_v18 }
  0xc3   :  { %v824_v19 = vpop.eup %823 }
 0x117   :  { %v124_v20 = vpop.f32.mrb[0].mxu0 }
 0x118   :  { %v128_v21 = vmul.f32 %v824_v19, %v124_v20  ;;  %v743_v22 = vpop.f32.mrb[1].mxu0 }
 0x11a   :  { %749 = vmatmul.mubr.msk.f32.vlgmr.msra.gmra.mrb[0].mxu1 %vm136_vm2, %v128_v21 }
 0x11b   :  { %764 = vmatprep.mubr.msk.f32.mxu1 %vm902_vm0, %v901_v0  ;;  %800 = vmatpush3.bf16.msra.mxu1 %v799_v25 }
 0x11c   :  { %801 = vmatprep.subr.bf16.mxu1 %v903_v11 }
 0x11f   :  { %803 = vmatpush3.bf16.msra.mxu1 %v802_v33 }
 0x120   :  { %810 = vmatprep.subr.bf16.mxu1 %v903_v11 }
 0x1ed   :  { %v206_v27 = vpop.f32.mrb[0].mxu1 }
 0x1ee   :  { %v207_v28 = vadd.f32 %v705_v26, %v206_v27  ;;  %v750_v29 = vpop.f32.mrb[1].mxu1 }
 0x1f0   :  { %v210_v30 = vmax.f32 %v207_v28, 0.0 }
 0x1f2   :  { %752 = vmatpush3.msra.mxu0 %v210_v30 }
 0x1f3   :  { %754 = vmatmul.mubr.msk.f32.vlgmr.msra.gmra.mrb[2].mxu0 %vm40_vm1, %v54_v13  ;;  %804 = vmatprep.subr.bf16.mxu0 %v903_v11 }
 0x1f4   :  { %775 = vmatprep.mubr.msk.f32.mxu0 %vm902_vm0, %v901_v0  ;;  %806 = vmatpush3.bf16.msra.mxu0 %v805_v39 }
 0x1f5   :  { %807 = vmatprep.subr.bf16.mxu0 %v903_v11 }
 0x1f8   :  { %809 = vmatpush3.bf16.msra.mxu0 %v808_v42 }
 0x1f9   :  { %785 = vmatprep.subr.mxu0 %v901_v0 }
 0x2c6   :  { %v277_v34 = vpop.f32.mrb[2].mxu0 }
 0x2c7   :  { %v281_v35 = vmul.f32 %v824_v19, %v277_v34  ;;  %v755_v36 = vpop.f32.mrb[3].mxu0 }
 0x2c9   :  { %765 = vmatmul.mubr.msk.f32.vlgmr.msra.gmra.mrb[2].mxu1 %vm291_vm3, %v281_v35 }
 0x2ca   :  { %782 = vmatprep.mubr.msk.f32.mxu1 %vm902_vm0, %v901_v0  ;;  %812 = vmatpush3.bf16.msra.mxu1 %v811_v58 }
 0x2cb   :  { %790 = vmatprep.subr.mxu1 %v901_v0 }
 0x39c   :  { %v361_v44 = vpop.f32.mrb[2].mxu1 }
 0x39d   :  { %v362_v45 = vadd.f32 %v708_v43, %v361_v44  ;;  %v766_v46 = vpop.f32.mrb[3].mxu1 }
 0x39f   :  { %v365_v47 = vmax.f32 %v362_v45, 0.0 }
 0x3a1   :  { %v366_v48 = vsel %vm291_vm3, %v365_v47, 0.0 }
 0x3a2   :  { %v367_v49 = vrot.slane %v366_v48, 4 }
 0x3a4   :  { %v368_v50 = vadd.f32 %v367_v49, %v366_v48 }
 0x3a6   :  { %v369_v51 = vrot.slane %v368_v50, 2 }
 0x3a8   :  { %v370_v52 = vadd.f32 %v369_v51, %v368_v50 }
 0x3aa   :  { %v371_v53 = vrot.slane %v370_v52, 1 }
 0x3ac   :  { %v372_v54 = vadd.f32 %v371_v53, %v370_v52 }
 0x3ae   :  { %v373_v55 = vmul.f32 0.125, %v372_v54 }
 0x3b0   :  { %776 = vmatmul.mubr.msk.f32.vlgmr.msra.gmra.mrb[4].mxu0 %vm291_vm3, %v373_v55 }
 0x3b1   :  { %787 = vmatprep.mubr.msk.f32.mxu0 %vm902_vm0, %v901_v0  ;;  %786 = vmatpush3.msra.mxu0 %v530_v1 }
 0x483   :  { %v448_v60 = vpop.f32.mrb[4].mxu0 }
 0x484   :  { %v449_v61 = vadd.f32 %v448_v60, %v378_v59  ;;  %v777_v62 = vpop.f32.mrb[5].mxu0 }
 0x486   :  { %v452_v63 = vmax.f32 %v449_v61, 0.0 }
 0x488   :  { %783 = vmatmul.mubr.msk.f32.vlgmr.msra.gmra.mrb[4].mxu1 %vm136_vm2, %v452_v63 }
 0x489   :  { %792 = vmatprep.mubr.msk.f32.mxu1 %vm902_vm0, %v901_v0  ;;  %791 = vmatpush3.msk.msra.mxu1 %vm612_vm4, %v606_v7  ;;  %v607_v0 = vld [vmem:[#allocation5 + $0x98] sm:$0x1] }
 0x55b   :  { %v525_v3 = vpop.f32.mrb[4].mxu1 }
 0x55c   :  { %v526_v4 = vadd.f32 %v525_v3, %v455_v2  ;;  %v784_v5 = vpop.f32.mrb[5].mxu1 }
 0x55e   :  { %v529_v6 = vmax.f32 %v526_v4, 0.0 }
 0x560   :  { %788 = vmatmul.mubr.msk.f32.vlgmr.msra.gmra.mrb[6].mxu0 %vm40_vm1, %v529_v6 }
 0x633   :  { %v601_v9 = vpop.f32.mrb[6].mxu0 }
 0x634   :  { %v602_v10 = vadd.f32 %v601_v9, %v531_v8  ;;  %v789_v11 = vpop.f32.mrb[7].mxu0 }
 0x636   :  { %v605_v12 = vmax.f32 %v602_v10, 0.0 }
 0x638   :  { %793 = vmatmul.mubr.msk.f32.vlgmr.msra.gmra.mrb[6].mxu1 %vm608_vm5, %v605_v12 }
 0x70b   :  { %v682_v13 = vpop.f32.mrb[6].mxu1 }
 0x70c   :  { %v683_v14 = vadd.f32 %v682_v13, %v607_v0  ;;  %v794_v15 = vpop.f32.mrb[7].mxu1 }
 0x70e   :  { %687 = vst.msk [vmem:[#allocation7] sm:$0x1] %vm686_vm6, %v683_v14 }
 0x70f   :  { %880 = shalt.err (!%p877_p6)
}
 0x710   :  { %s881_s11 = scalar_lea.hbm %s994_s2, 16 }
 0x711   :  { %p882_p7 = scmp.ne.s32.totalorder %s994_s2, %s881_s11  ;;  %p885_p8 = scmp.lt.u32.totalorder %s881_s11, %s994_s2 }
 0x713   :  { %p887_p9 = pnand %p885_p8, %p882_p7 }
 0x715   :  { %890 = shalt.err (!%p887_p9)
}
 0x716   :  { %697 = dma.vmem_to_hbm [thread:$0]  %s695_s6, 16, %s994_s2, [#allocation4]  }
 0x717   :  { %895 = dma.done.wait [#allocation4], 16  }
 0x718   :  { %896 = vsyncadd [#allocation4], 4294967280 }
 0x719   :  { %701 = vsyncpa [#allocation3], 1 }
 0x71a   :  { %702 = vsyncpa [#allocation6], 1 }
 0x71b   :  { %703 = vsyncpa [#allocation4], 1 }

</bundles_post_ra>
